<compile_context>
chip_gen: v6e
topology: v6e:2x2x1
jax: 0.10.0
libtpu: 0.0.40
codegen_flags: <defaults>
</compile_context>

<pallas_src>
import re

import jax
import jax.numpy as jnp
from jax import lax
from jax.experimental import pallas as pl
from jax.experimental.pallas import tpu as pltpu


# ---------------------------------------------------------------------------
# Hardware introspection (best effort; safe fallbacks).
# ---------------------------------------------------------------------------
def _tpu_generation(default=6):
    try:
        kind = jax.devices()[0].device_kind.lower()
    except Exception:
        return default
    m = re.search(r"(\d+)", kind)
    return int(m.group(1)) if m else default


def _vmem_capacity_bytes(gen):
    try:
        cap = int(pltpu.get_tpu_info().vmem_capacity_bytes)
        if cap > 0:
            return cap
    except Exception:
        pass
    return (64 << 20) if gen >= 7 else (128 << 20)


def _cast(a, dt):
    a = jnp.asarray(a)
    return a if a.dtype == jnp.dtype(dt) else a.astype(dt)


# ---------------------------------------------------------------------------
# Kernel (specialized at trace time on epilogue dtype / layer-3 path).
# ---------------------------------------------------------------------------
def _make_value_kernel(epilogue_dtype, mxu_layer3):
    def kernel(x_ref, w1_ref, b1_ref, w2_ref, b2_ref, w3_ref, b3_ref, o_ref):
        """Fused 3-layer MLP on one batch tile.

        x_ref : (block_b, S)  state tile, already in compute dtype
        w1_ref: (H, S)   w2_ref: (H, H)    torch nn.Linear (out, in) layout
        b1_ref: (H, 1)   b2_ref: (H, 1)    biases (epilogue dtype), lane-broadcast
        w3_ref: (1, H) if mxu_layer3 else (H, 1)
        b3_ref: (1, 1) f32
        o_ref : (1, block_b)  lane-dense output row
        """
        cdt = w1_ref.dtype
        x = x_ref[...]                                   # no in-kernel cast

        # Layer 1: W1 @ x^T via trans-B dot_general -> (H, block_b), f32 acc.
        h = lax.dot_general(w1_ref[...], x, (((1,), (1,)), ((), ())),
                            preferred_element_type=jnp.float32)
        h = jnp.maximum(h.astype(epilogue_dtype) + b1_ref[...], 0).astype(cdt)

        # Layer 2: (H, H) @ (H, block_b) -> (H, block_b), f32 acc.
        h = jnp.dot(w2_ref[...], h, preferred_element_type=jnp.float32)
        h = jnp.maximum(h.astype(epilogue_dtype) + b2_ref[...], 0)

        # Layer 3 (H -> 1): M=1 MXU matmul (v6e/v7x) or VPU mul + sublane reduce.
        if mxu_layer3:
            out = jnp.dot(w3_ref[...], h.astype(cdt),
                          preferred_element_type=jnp.float32)
        else:
            out = jnp.sum(h.astype(jnp.float32) * w3_ref[...],
                          axis=0, keepdims=True)
        o_ref[...] = (out + b3_ref[...]).astype(o_ref.dtype)

    return kernel


# ---------------------------------------------------------------------------
# Tiling / VMEM sizing helpers.
# ---------------------------------------------------------------------------
def _pick_block_b_cap(S, H, cdt_size, vmem_cap, gen):
    """Largest lane-dense batch tile keeping the working set < ~45% of VMEM."""
    budget = int(0.45 * vmem_cap)
    weights = (H * S + H * H + H) * cdt_size + (2 * H + 1) * 4
    per_lane = 2 * S * cdt_size + 2 * 4 + 3 * H * 4   # dbl-buffered tile + out + acts
    cap = max((budget - 2 * weights) // max(per_lane, 1), 128)
    cap = min(cap, 2048 if gen >= 7 else 8192)        # v7x has 64 MiB VMEM
    return max((cap // 128) * 128, 128)


def _vmem_bytes_estimate(S, H, block_b, cdt_size):
    tile_io = 2 * (block_b * S * cdt_size + block_b * 4)
    weights = 2 * ((H * S + H * H + H) * cdt_size + (2 * H + 1) * 4)
    acts = 3 * H * block_b * 4
    return tile_io + weights + acts


# ---------------------------------------------------------------------------
# Public forward.
# ---------------------------------------------------------------------------
def value_network_forward(state, params, *, block_b=None,
                          compute_dtype=jnp.bfloat16):
    """ValueNetwork forward: relu(W1 x + b1) -> relu(W2 . + b2) -> W3 . + b3.

    state : (B, state_dim) array.
    params: torch nn.Linear layout:
        w1 (H, S), b1 (H, 1), w2 (H, H), b2 (H, 1), w3 (H, 1), b3 (1, 1).
    compute_dtype: MXU operand dtype (bf16 default; f32 accumulation always).
        bf16 quantizes state/activations/weights; opt into f32 for exactness.
    Returns (B, 1) float32.
    """
    state = jnp.asarray(state)
    B, S = state.shape
    H = params["w1"].shape[0]

    gen = _tpu_generation()
    vmem_cap = _vmem_capacity_bytes(gen)
    cdt = jnp.dtype(compute_dtype)
    cdt_size = cdt.itemsize
    # v5e (and older) VPU has no bf16: keep the elementwise epilogue in f32 there.
    epi_dtype = jnp.float32 if (gen < 6 or cdt == jnp.dtype(jnp.float32)) else cdt
    # Layer 3 on the MXU where it has slack (v6e/v7x); VPU/XLU filler on v5e.
    mxu_l3_pref = gen >= 6

    # ---- batch tile (lane axis of the output / activations) ----------------
    cap = _pick_block_b_cap(S, H, cdt_size, vmem_cap, gen)
    if block_b is None:
        if gen >= 7 and B > 128:
            # >= 2 lane-dense tiles so both v7x TensorCores get work and the
            # state DMA overlaps compute.
            block_b = min(cap, ((pl.cdiv(B, 2) + 127) // 128) * 128)
        else:
            block_b = min(cap, B)
    block_b = min(int(block_b), B)
    if block_b < B:
        block_b = ((block_b + 127) // 128) * 128     # keep tiles lane-dense
        if block_b >= B:
            block_b = B
    b_pad = pl.cdiv(B, block_b) * block_b
    grid = (b_pad // block_b,)

    # ---- operands: cast once in the wrapper (no in-kernel casts) -----------
    x = _cast(state, cdt)                            # (B, S) in compute dtype
    if b_pad != B:
        x = jnp.pad(x, ((0, b_pad - B), (0, 0)))     # zero-pad ragged batches
    w1 = _cast(params["w1"], cdt)                    # (H, S)
    w2 = _cast(params["w2"], cdt)                    # (H, H)
    b1 = _cast(params["b1"], epi_dtype)              # (H, 1)
    b2 = _cast(params["b2"], epi_dtype)              # (H, 1)
    b3 = _cast(params["b3"], jnp.float32)            # (1, 1)

    flops = 2 * b_pad * (S * H + H * H + H)
    bytes_accessed = (b_pad * S * cdt_size
                      + (H * S + H * H + H) * cdt_size
                      + 2 * H * jnp.dtype(epi_dtype).itemsize + 4
                      + b_pad * 4)
    est = _vmem_bytes_estimate(S, H, block_b, cdt_size)
    vmem_limit = int(min(max(2 * est + (8 << 20), 32 << 20),
                         int(0.9 * vmem_cap)))

    def run(single_buffer_weights, use_mxu_l3):
        if use_mxu_l3:
            w3 = _cast(params["w3"], cdt).reshape(1, H)       # row for M=1 matmul
        else:
            w3 = _cast(params["w3"], jnp.float32).reshape(H, 1)

        def const_spec(a):
            # Constant index map -> fetched once; single-buffered to save VMEM.
            if single_buffer_weights:
                return pl.BlockSpec(a.shape, lambda i: (0, 0),
                                    pipeline_mode=pl.Buffered(1))
            return pl.BlockSpec(a.shape, lambda i: (0, 0))

        return pl.pallas_call(
            _make_value_kernel(epi_dtype, use_mxu_l3),
            out_shape=jax.ShapeDtypeStruct((1, b_pad), jnp.float32),
            grid_spec=pltpu.PrefetchScalarGridSpec(
                num_scalar_prefetch=0,
                grid=grid,
                in_specs=[
                    pl.BlockSpec((block_b, S), lambda i: (i, 0)),   # state tile
                    const_spec(w1), const_spec(b1),
                    const_spec(w2), const_spec(b2),
                    const_spec(w3), const_spec(b3),
                ],
                out_specs=pl.BlockSpec((1, block_b), lambda i: (0, i)),
            ),
            compiler_params=pltpu.CompilerParams(
                dimension_semantics=("parallel",),
                vmem_limit_bytes=vmem_limit),
            cost_estimate=pl.CostEstimate(
                flops=int(flops), transcendentals=0,
                bytes_accessed=int(bytes_accessed)),
        )(x, w1, b1, w2, b2, w3, b3)

    # Fallback ladder: drop single-buffered weight specs and/or the M=1 MXU
    # layer-3 matmul if the local Pallas/Mosaic build rejects them; the kernel
    # always runs.
    configs = [(True, mxu_l3_pref), (False, mxu_l3_pref)]
    if mxu_l3_pref:
        configs += [(True, False), (False, False)]
    out_row, err = None, None
    for single_buf, use_mxu_l3 in configs:
        try:
            out_row = run(single_buf, use_mxu_l3)
            break
        except Exception as e:      # lowering/compile rejection -> next config
            err = e
    if out_row is None:
        raise err

    # Padded lanes carry bias-derived garbage; slice them off before returning.
    return out_row[0, :B].reshape(B, 1)


def prepare_value_network_params(params, compute_dtype=jnp.bfloat16):
    """Pre-cast the big matmul weights once so per-call casts are no-ops."""
    p = dict(params)
    p["w1"] = jnp.asarray(params["w1"]).astype(compute_dtype)
    p["w2"] = jnp.asarray(params["w2"]).astype(compute_dtype)
    return p


# ---------------------------------------------------------------------------
# Init mirroring the PyTorch module + pure-JAX reference.
# ---------------------------------------------------------------------------
def init_value_network_params(key, state_dim, hidden_dim, init_w=0.003):
    """nn.Linear default uniform(+-1/sqrt(fan_in)); linear3 uniform(+-init_w)."""
    k1, k2, k3, k4, k5, k6 = jax.random.split(key, 6)

    def lin_init(kw, kb, fan_in, fan_out):
        bound = float(fan_in) ** -0.5
        w = jax.random.uniform(kw, (fan_out, fan_in), jnp.float32, -bound, bound)
        b = jax.random.uniform(kb, (fan_out, 1), jnp.float32, -bound, bound)
        return w, b

    w1, b1 = lin_init(k1, k2, state_dim, hidden_dim)
    w2, b2 = lin_init(k3, k4, hidden_dim, hidden_dim)
    w3 = jax.random.uniform(k5, (hidden_dim, 1), jnp.float32, -init_w, init_w)
    b3 = jax.random.uniform(k6, (1, 1), jnp.float32, -init_w, init_w)
    return {"w1": w1, "b1": b1, "w2": w2, "b2": b2, "w3": w3, "b3": b3}


def _reference_forward(state, p):
    h1 = jnp.maximum(state @ p["w1"].T + p["b1"].T, 0.0)
    h2 = jnp.maximum(h1 @ p["w2"].T + p["b2"].T, 0.0)
    return h2 @ p["w3"] + p["b3"]


if __name__ == "__main__":
    key = jax.random.PRNGKey(0)
    k_param, k_state, k_state2 = jax.random.split(key, 3)

    batch, state_dim, hidden_dim = 16, 16, 32
    params = init_value_network_params(k_param, state_dim, hidden_dim)
    state = jax.random.normal(k_state, (batch, state_dim), jnp.float32)
    ref = _reference_forward(state, params)

    # Exact-ish path: f32 MXU operands, single lane-dense tile.
    out_f32 = jax.block_until_ready(
        value_network_forward(state, params, compute_dtype=jnp.float32))
    assert out_f32.shape == (batch, 1)
    assert jnp.allclose(out_f32, ref, atol=1e-4, rtol=1e-4), "f32 mismatch vs reference"

    # Fast path: pre-cast bf16 weights, bf16 state/epilogue, f32 accumulation.
    fast_params = prepare_value_network_params(params)
    out_bf16 = jax.block_until_ready(value_network_forward(state, fast_params))
    assert out_bf16.shape == (batch, 1)
    assert jnp.allclose(out_bf16, ref, atol=5e-2, rtol=5e-2), "bf16 mismatch vs reference"

    # Tiled + padded path: non-divisible batch, multi-step grid, 128-lane tiles.
    batch2 = 300
    state2 = jax.random.normal(k_state2, (batch2, state_dim), jnp.float32)
    ref2 = _reference_forward(state2, params)
    out2 = jax.block_until_ready(
        value_network_forward(state2, params, block_b=128,
                              compute_dtype=jnp.float32))
    assert out2.shape == (batch2, 1)
    assert jnp.allclose(out2, ref2, atol=1e-4, rtol=1e-4), "tiled mismatch vs reference"

    print("KERNEL_OK")
</pallas_src>

<mosaic_0001>
module attributes {stable_mosaic.version = 11 : i64} {
  func.func @kernel(%arg0: i32, %arg1: memref<16x16xf32, #tpu.memory_space<vmem>>, %arg2: memref<32x16xf32, #tpu.memory_space<vmem>>, %arg3: memref<32x1xf32, #tpu.memory_space<vmem>>, %arg4: memref<32x32xf32, #tpu.memory_space<vmem>>, %arg5: memref<32x1xf32, #tpu.memory_space<vmem>>, %arg6: memref<1x32xf32, #tpu.memory_space<vmem>>, %arg7: memref<1x1xf32, #tpu.memory_space<vmem>>, %arg8: memref<1x16xf32, #tpu.memory_space<vmem>>) attributes {dimension_semantics = [#tpu.dimension_semantics<parallel>], iteration_bounds = array<i64: 1>, scalar_prefetch = 0 : i64, scratch_operands = 0 : i64, tpu.core_type = #tpu.core_type<tc>, window_params = [{transform_indices = @transform_0, window_bounds = array<i64: 16, 16>}, {pipeline_mode = #tpu.pipeline_mode<synchronous>, transform_indices = @transform_1, window_bounds = array<i64: 32, 16>}, {pipeline_mode = #tpu.pipeline_mode<synchronous>, transform_indices = @transform_2, window_bounds = array<i64: 32, 1>}, {pipeline_mode = #tpu.pipeline_mode<synchronous>, transform_indices = @transform_3, window_bounds = array<i64: 32, 32>}, {pipeline_mode = #tpu.pipeline_mode<synchronous>, transform_indices = @transform_4, window_bounds = array<i64: 32, 1>}, {pipeline_mode = #tpu.pipeline_mode<synchronous>, transform_indices = @transform_5, window_bounds = array<i64: 1, 32>}, {pipeline_mode = #tpu.pipeline_mode<synchronous>, transform_indices = @transform_6, window_bounds = array<i64: 1, 1>}, {transform_indices = @transform_7, window_bounds = array<i64: 1, 16>}]} {
    %c0 = arith.constant 0 : index
    %c0_0 = arith.constant 0 : index
    %0 = vector.load %arg1[%c0, %c0_0] : memref<16x16xf32, #tpu.memory_space<vmem>>, vector<16x16xf32>
    %c0_1 = arith.constant 0 : index
    %c0_2 = arith.constant 0 : index
    %1 = vector.load %arg2[%c0_1, %c0_2] : memref<32x16xf32, #tpu.memory_space<vmem>>, vector<32x16xf32>
    %cst = arith.constant dense<0.000000e+00> : vector<32x16xf32>
    %2 = tpu.matmul %1, %0, %cst {dimension_numbers = #tpu.dot_dimension_numbers<[1], [1], [0], [0], [0, 0, 1, 0], [], []>} : vector<32x16xf32>, vector<16x16xf32>, vector<32x16xf32> -> vector<32x16xf32>
    %c0_3 = arith.constant 0 : index
    %c0_4 = arith.constant 0 : index
    %3 = vector.load %arg3[%c0_3, %c0_4] : memref<32x1xf32, #tpu.memory_space<vmem>>, vector<32x1xf32>
    %4 = vector.broadcast %3 : vector<32x1xf32> to vector<32x16xf32>
    %5 = arith.addf %2, %4 : vector<32x16xf32>
    %cst_5 = arith.constant 0.000000e+00 : f32
    %6 = vector.broadcast %cst_5 : f32 to vector<32x16xf32>
    %7 = arith.maximumf %5, %6 : vector<32x16xf32>
    %c0_6 = arith.constant 0 : index
    %c0_7 = arith.constant 0 : index
    %8 = vector.load %arg4[%c0_6, %c0_7] : memref<32x32xf32, #tpu.memory_space<vmem>>, vector<32x32xf32>
    %cst_8 = arith.constant dense<0.000000e+00> : vector<32x16xf32>
    %9 = tpu.matmul %8, %7, %cst_8 {dimension_numbers = #tpu.dot_dimension_numbers<[1], [0], [0], [1], [0, 0, 1, 1], [], []>} : vector<32x32xf32>, vector<32x16xf32>, vector<32x16xf32> -> vector<32x16xf32>
    %c0_9 = arith.constant 0 : index
    %c0_10 = arith.constant 0 : index
    %10 = vector.load %arg5[%c0_9, %c0_10] : memref<32x1xf32, #tpu.memory_space<vmem>>, vector<32x1xf32>
    %11 = vector.broadcast %10 : vector<32x1xf32> to vector<32x16xf32>
    %12 = arith.addf %9, %11 : vector<32x16xf32>
    %cst_11 = arith.constant 0.000000e+00 : f32
    %13 = vector.broadcast %cst_11 : f32 to vector<32x16xf32>
    %14 = arith.maximumf %12, %13 : vector<32x16xf32>
    %c0_12 = arith.constant 0 : index
    %c0_13 = arith.constant 0 : index
    %15 = vector.load %arg6[%c0_12, %c0_13] : memref<1x32xf32, #tpu.memory_space<vmem>>, vector<1x32xf32>
    %cst_14 = arith.constant dense<0.000000e+00> : vector<1x16xf32>
    %16 = tpu.matmul %15, %14, %cst_14 {dimension_numbers = #tpu.dot_dimension_numbers<[1], [0], [0], [1], [0, 0, 1, 1], [], []>} : vector<1x32xf32>, vector<32x16xf32>, vector<1x16xf32> -> vector<1x16xf32>
    %c0_15 = arith.constant 0 : index
    %c0_16 = arith.constant 0 : index
    %17 = vector.load %arg7[%c0_15, %c0_16] : memref<1x1xf32, #tpu.memory_space<vmem>>, vector<1x1xf32>
    %18 = vector.broadcast %17 : vector<1x1xf32> to vector<1x16xf32>
    %19 = arith.addf %16, %18 : vector<1x16xf32>
    %c0_17 = arith.constant 0 : index
    %c0_18 = arith.constant 0 : index
    %20 = vector.load %arg8[%c0_17, %c0_18] : memref<1x16xf32, #tpu.memory_space<vmem>>, vector<1x16xf32>
    tpu.vector_store %arg8[%c0_17, %c0_18], %19 {strides = array<i32>} : memref<1x16xf32, #tpu.memory_space<vmem>>, vector<1x16xf32>,
    return
  }
  func.func @transform_0(%arg0: i32) -> (i32, i32) {
    %c0_i32 = arith.constant 0 : i32
    %c0_i32_0 = arith.constant 0 : i32
    return %arg0, %c0_i32 : i32, i32
  }
  func.func @transform_1(%arg0: i32) -> (i32, i32) {
    %c0_i32 = arith.constant 0 : i32
    %c0_i32_0 = arith.constant 0 : i32
    %c0_i32_1 = arith.constant 0 : i32
    return %c0_i32, %c0_i32_0 : i32, i32
  }
  func.func @transform_2(%arg0: i32) -> (i32, i32) {
    %c0_i32 = arith.constant 0 : i32
    %c0_i32_0 = arith.constant 0 : i32
    %c0_i32_1 = arith.constant 0 : i32
    return %c0_i32, %c0_i32_0 : i32, i32
  }
  func.func @transform_3(%arg0: i32) -> (i32, i32) {
    %c0_i32 = arith.constant 0 : i32
    %c0_i32_0 = arith.constant 0 : i32
    %c0_i32_1 = arith.constant 0 : i32
    return %c0_i32, %c0_i32_0 : i32, i32
  }
  func.func @transform_4(%arg0: i32) -> (i32, i32) {
    %c0_i32 = arith.constant 0 : i32
    %c0_i32_0 = arith.constant 0 : i32
    %c0_i32_1 = arith.constant 0 : i32
    return %c0_i32, %c0_i32_0 : i32, i32
  }
  func.func @transform_5(%arg0: i32) -> (i32, i32) {
    %c0_i32 = arith.constant 0 : i32
    %c0_i32_0 = arith.constant 0 : i32
    %c0_i32_1 = arith.constant 0 : i32
    return %c0_i32, %c0_i32_0 : i32, i32
  }
  func.func @transform_6(%arg0: i32) -> (i32, i32) {
    %c0_i32 = arith.constant 0 : i32
    %c0_i32_0 = arith.constant 0 : i32
    %c0_i32_1 = arith.constant 0 : i32
    return %c0_i32, %c0_i32_0 : i32, i32
  }
  func.func @transform_7(%arg0: i32) -> (i32, i32) {
    %c0_i32 = arith.constant 0 : i32
    %c0_i32_0 = arith.constant 0 : i32
    return %c0_i32, %arg0 : i32, i32
  }
}

module attributes {stable_mosaic.version = 11 : i64} {
  func.func @kernel(%arg0: i32, %arg1: memref<16x16xf32, #tpu.memory_space<vmem>>, %arg2: memref<32x16xf32, #tpu.memory_space<vmem>>, %arg3: memref<32x1xf32, #tpu.memory_space<vmem>>, %arg4: memref<32x32xf32, #tpu.memory_space<vmem>>, %arg5: memref<32x1xf32, #tpu.memory_space<vmem>>, %arg6: memref<1x32xf32, #tpu.memory_space<vmem>>, %arg7: memref<1x1xf32, #tpu.memory_space<vmem>>, %arg8: memref<1x16xf32, #tpu.memory_space<vmem>>) attributes {dimension_semantics = [#tpu.dimension_semantics<parallel>], iteration_bounds = array<i64: 1>, scalar_prefetch = 0 : i64, scratch_operands = 0 : i64, tpu.core_type = #tpu.core_type<tc>, window_params = [{transform_indices = @transform_0, window_bounds = array<i64: 16, 16>}, {pipeline_mode = #tpu.pipeline_mode<synchronous>, transform_indices = @transform_1, window_bounds = array<i64: 32, 16>}, {pipeline_mode = #tpu.pipeline_mode<synchronous>, transform_indices = @transform_2, window_bounds = array<i64: 32, 1>}, {pipeline_mode = #tpu.pipeline_mode<synchronous>, transform_indices = @transform_3, window_bounds = array<i64: 32, 32>}, {pipeline_mode = #tpu.pipeline_mode<synchronous>, transform_indices = @transform_4, window_bounds = array<i64: 32, 1>}, {pipeline_mode = #tpu.pipeline_mode<synchronous>, transform_indices = @transform_5, window_bounds = array<i64: 1, 32>}, {pipeline_mode = #tpu.pipeline_mode<synchronous>, transform_indices = @transform_6, window_bounds = array<i64: 1, 1>}, {transform_indices = @transform_7, window_bounds = array<i64: 1, 16>}]} {
    %c0 = arith.constant 0 : index
    %c0_0 = arith.constant 0 : index
    %0 = vector.load %arg1[%c0, %c0_0] : memref<16x16xf32, #tpu.memory_space<vmem>>, vector<16x16xf32>
    %c0_1 = arith.constant 0 : index
    %c0_2 = arith.constant 0 : index
    %1 = vector.load %arg2[%c0_1, %c0_2] : memref<32x16xf32, #tpu.memory_space<vmem>>, vector<32x16xf32>
    %cst = arith.constant dense<0.000000e+00> : vector<32x16xf32>
    %2 = tpu.matmul %1, %0, %cst {dimension_numbers = #tpu.dot_dimension_numbers<[1], [1], [0], [0], [0, 0, 1, 0], [], []>} : vector<32x16xf32>, vector<16x16xf32>, vector<32x16xf32> -> vector<32x16xf32>
    %c0_3 = arith.constant 0 : index
    %c0_4 = arith.constant 0 : index
    %3 = vector.load %arg3[%c0_3, %c0_4] : memref<32x1xf32, #tpu.memory_space<vmem>>, vector<32x1xf32>
    %4 = vector.broadcast %3 : vector<32x1xf32> to vector<32x16xf32>
    %5 = arith.addf %2, %4 : vector<32x16xf32>
    %cst_5 = arith.constant 0.000000e+00 : f32
    %6 = vector.broadcast %cst_5 : f32 to vector<32x16xf32>
    %7 = arith.maximumf %5, %6 : vector<32x16xf32>
    %c0_6 = arith.constant 0 : index
    %c0_7 = arith.constant 0 : index
    %8 = vector.load %arg4[%c0_6, %c0_7] : memref<32x32xf32, #tpu.memory_space<vmem>>, vector<32x32xf32>
    %cst_8 = arith.constant dense<0.000000e+00> : vector<32x16xf32>
    %9 = tpu.matmul %8, %7, %cst_8 {dimension_numbers = #tpu.dot_dimension_numbers<[1], [0], [0], [1], [0, 0, 1, 1], [], []>} : vector<32x32xf32>, vector<32x16xf32>, vector<32x16xf32> -> vector<32x16xf32>
    %c0_9 = arith.constant 0 : index
    %c0_10 = arith.constant 0 : index
    %10 = vector.load %arg5[%c0_9, %c0_10] : memref<32x1xf32, #tpu.memory_space<vmem>>, vector<32x1xf32>
    %11 = vector.broadcast %10 : vector<32x1xf32> to vector<32x16xf32>
    %12 = arith.addf %9, %11 : vector<32x16xf32>
    %cst_11 = arith.constant 0.000000e+00 : f32
    %13 = vector.broadcast %cst_11 : f32 to vector<32x16xf32>
    %14 = arith.maximumf %12, %13 : vector<32x16xf32>
    %c0_12 = arith.constant 0 : index
    %c0_13 = arith.constant 0 : index
    %15 = vector.load %arg6[%c0_12, %c0_13] : memref<1x32xf32, #tpu.memory_space<vmem>>, vector<1x32xf32>
    %cst_14 = arith.constant dense<0.000000e+00> : vector<1x16xf32>
    %16 = tpu.matmul %15, %14, %cst_14 {dimension_numbers = #tpu.dot_dimension_numbers<[1], [0], [0], [1], [0, 0, 1, 1], [], []>} : vector<1x32xf32>, vector<32x16xf32>, vector<1x16xf32> -> vector<1x16xf32>
    %c0_15 = arith.constant 0 : index
    %c0_16 = arith.constant 0 : index
    %17 = vector.load %arg7[%c0_15, %c0_16] : memref<1x1xf32, #tpu.memory_space<vmem>>, vector<1x1xf32>
    %18 = vector.broadcast %17 : vector<1x1xf32> to vector<1x16xf32>
    %19 = arith.addf %16, %18 : vector<1x16xf32>
    %c0_17 = arith.constant 0 : index
    %c0_18 = arith.constant 0 : index
    %20 = vector.load %arg8[%c0_17, %c0_18] : memref<1x16xf32, #tpu.memory_space<vmem>>, vector<1x16xf32>
    tpu.vector_store %arg8[%c0_17, %c0_18], %19 {strides = array<i32>} : memref<1x16xf32, #tpu.memory_space<vmem>>, vector<1x16xf32>,
    return
  }
  func.func @transform_0(%arg0: i32) -> (i32, i32) {
    %c0_i32 = arith.constant 0 : i32
    %c0_i32_0 = arith.constant 0 : i32
    return %arg0, %c0_i32 : i32, i32
  }
  func.func @transform_1(%arg0: i32) -> (i32, i32) {
    %c0_i32 = arith.constant 0 : i32
    %c0_i32_0 = arith.constant 0 : i32
    %c0_i32_1 = arith.constant 0 : i32
    return %c0_i32, %c0_i32_0 : i32, i32
  }
  func.func @transform_2(%arg0: i32) -> (i32, i32) {
    %c0_i32 = arith.constant 0 : i32
    %c0_i32_0 = arith.constant 0 : i32
    %c0_i32_1 = arith.constant 0 : i32
    return %c0_i32, %c0_i32_0 : i32, i32
  }
  func.func @transform_3(%arg0: i32) -> (i32, i32) {
    %c0_i32 = arith.constant 0 : i32
    %c0_i32_0 = arith.constant 0 : i32
    %c0_i32_1 = arith.constant 0 : i32
    return %c0_i32, %c0_i32_0 : i32, i32
  }
  func.func @transform_4(%arg0: i32) -> (i32, i32) {
    %c0_i32 = arith.constant 0 : i32
    %c0_i32_0 = arith.constant 0 : i32
    %c0_i32_1 = arith.constant 0 : i32
    return %c0_i32, %c0_i32_0 : i32, i32
  }
  func.func @transform_5(%arg0: i32) -> (i32, i32) {
    %c0_i32 = arith.constant 0 : i32
    %c0_i32_0 = arith.constant 0 : i32
    %c0_i32_1 = arith.constant 0 : i32
    return %c0_i32, %c0_i32_0 : i32, i32
  }
  func.func @transform_6(%arg0: i32) -> (i32, i32) {
    %c0_i32 = arith.constant 0 : i32
    %c0_i32_0 = arith.constant 0 : i32
    %c0_i32_1 = arith.constant 0 : i32
    return %c0_i32, %c0_i32_0 : i32, i32
  }
  func.func @transform_7(%arg0: i32) -> (i32, i32) {
    %c0_i32 = arith.constant 0 : i32
    %c0_i32_0 = arith.constant 0 : i32
    return %c0_i32, %arg0 : i32, i32
  }
}

module attributes {stable_mosaic.version = 11 : i64} {
  func.func @kernel(%arg0: i32, %arg1: memref<16x16xf32, #tpu.memory_space<vmem>>, %arg2: memref<32x16xf32, #tpu.memory_space<vmem>>, %arg3: memref<32x1xf32, #tpu.memory_space<vmem>>, %arg4: memref<32x32xf32, #tpu.memory_space<vmem>>, %arg5: memref<32x1xf32, #tpu.memory_space<vmem>>, %arg6: memref<32x1xf32, #tpu.memory_space<vmem>>, %arg7: memref<1x1xf32, #tpu.memory_space<vmem>>, %arg8: memref<1x16xf32, #tpu.memory_space<vmem>>) attributes {dimension_semantics = [#tpu.dimension_semantics<parallel>], iteration_bounds = array<i64: 1>, scalar_prefetch = 0 : i64, scratch_operands = 0 : i64, tpu.core_type = #tpu.core_type<tc>, window_params = [{transform_indices = @transform_0, window_bounds = array<i64: 16, 16>}, {pipeline_mode = #tpu.pipeline_mode<synchronous>, transform_indices = @transform_1, window_bounds = array<i64: 32, 16>}, {pipeline_mode = #tpu.pipeline_mode<synchronous>, transform_indices = @transform_2, window_bounds = array<i64: 32, 1>}, {pipeline_mode = #tpu.pipeline_mode<synchronous>, transform_indices = @transform_3, window_bounds = array<i64: 32, 32>}, {pipeline_mode = #tpu.pipeline_mode<synchronous>, transform_indices = @transform_4, window_bounds = array<i64: 32, 1>}, {pipeline_mode = #tpu.pipeline_mode<synchronous>, transform_indices = @transform_5, window_bounds = array<i64: 32, 1>}, {pipeline_mode = #tpu.pipeline_mode<synchronous>, transform_indices = @transform_6, window_bounds = array<i64: 1, 1>}, {transform_indices = @transform_7, window_bounds = array<i64: 1, 16>}]} {
    %c0 = arith.constant 0 : index
    %c0_0 = arith.constant 0 : index
    %0 = vector.load %arg1[%c0, %c0_0] : memref<16x16xf32, #tpu.memory_space<vmem>>, vector<16x16xf32>
    %c0_1 = arith.constant 0 : index
    %c0_2 = arith.constant 0 : index
    %1 = vector.load %arg2[%c0_1, %c0_2] : memref<32x16xf32, #tpu.memory_space<vmem>>, vector<32x16xf32>
    %cst = arith.constant dense<0.000000e+00> : vector<32x16xf32>
    %2 = tpu.matmul %1, %0, %cst {dimension_numbers = #tpu.dot_dimension_numbers<[1], [1], [0], [0], [0, 0, 1, 0], [], []>} : vector<32x16xf32>, vector<16x16xf32>, vector<32x16xf32> -> vector<32x16xf32>
    %c0_3 = arith.constant 0 : index
    %c0_4 = arith.constant 0 : index
    %3 = vector.load %arg3[%c0_3, %c0_4] : memref<32x1xf32, #tpu.memory_space<vmem>>, vector<32x1xf32>
    %4 = vector.broadcast %3 : vector<32x1xf32> to vector<32x16xf32>
    %5 = arith.addf %2, %4 : vector<32x16xf32>
    %cst_5 = arith.constant 0.000000e+00 : f32
    %6 = vector.broadcast %cst_5 : f32 to vector<32x16xf32>
    %7 = arith.maximumf %5, %6 : vector<32x16xf32>
    %c0_6 = arith.constant 0 : index
    %c0_7 = arith.constant 0 : index
    %8 = vector.load %arg4[%c0_6, %c0_7] : memref<32x32xf32, #tpu.memory_space<vmem>>, vector<32x32xf32>
    %cst_8 = arith.constant dense<0.000000e+00> : vector<32x16xf32>
    %9 = tpu.matmul %8, %7, %cst_8 {dimension_numbers = #tpu.dot_dimension_numbers<[1], [0], [0], [1], [0, 0, 1, 1], [], []>} : vector<32x32xf32>, vector<32x16xf32>, vector<32x16xf32> -> vector<32x16xf32>
    %c0_9 = arith.constant 0 : index
    %c0_10 = arith.constant 0 : index
    %10 = vector.load %arg5[%c0_9, %c0_10] : memref<32x1xf32, #tpu.memory_space<vmem>>, vector<32x1xf32>
    %11 = vector.broadcast %10 : vector<32x1xf32> to vector<32x16xf32>
    %12 = arith.addf %9, %11 : vector<32x16xf32>
    %cst_11 = arith.constant 0.000000e+00 : f32
    %13 = vector.broadcast %cst_11 : f32 to vector<32x16xf32>
    %14 = arith.maximumf %12, %13 : vector<32x16xf32>
    %c0_12 = arith.constant 0 : index
    %c0_13 = arith.constant 0 : index
    %15 = vector.load %arg6[%c0_12, %c0_13] : memref<32x1xf32, #tpu.memory_space<vmem>>, vector<32x1xf32>
    %16 = vector.broadcast %15 : vector<32x1xf32> to vector<32x16xf32>
    %17 = arith.mulf %14, %16 : vector<32x16xf32>
    %cst_14 = arith.constant dense<0.000000e+00> : vector<16xf32>
    %18 = vector.multi_reduction <add>, %17, %cst_14 [0] : vector<32x16xf32> to vector<16xf32>
    %19 = vector.shape_cast %18 : vector<16xf32> to vector<1x16xf32>
    %c0_15 = arith.constant 0 : index
    %c0_16 = arith.constant 0 : index
    %20 = vector.load %arg7[%c0_15, %c0_16] : memref<1x1xf32, #tpu.memory_space<vmem>>, vector<1x1xf32>
    %21 = vector.broadcast %20 : vector<1x1xf32> to vector<1x16xf32>
    %22 = arith.addf %19, %21 : vector<1x16xf32>
    %c0_17 = arith.constant 0 : index
    %c0_18 = arith.constant 0 : index
    %23 = vector.load %arg8[%c0_17, %c0_18] : memref<1x16xf32, #tpu.memory_space<vmem>>, vector<1x16xf32>
    tpu.vector_store %arg8[%c0_17, %c0_18], %22 {strides = array<i32>} : memref<1x16xf32, #tpu.memory_space<vmem>>, vector<1x16xf32>,
    return
  }
  func.func @transform_0(%arg0: i32) -> (i32, i32) {
    %c0_i32 = arith.constant 0 : i32
    %c0_i32_0 = arith.constant 0 : i32
    return %arg0, %c0_i32 : i32, i32
  }
  func.func @transform_1(%arg0: i32) -> (i32, i32) {
    %c0_i32 = arith.constant 0 : i32
    %c0_i32_0 = arith.constant 0 : i32
    %c0_i32_1 = arith.constant 0 : i32
    return %c0_i32, %c0_i32_0 : i32, i32
  }
  func.func @transform_2(%arg0: i32) -> (i32, i32) {
    %c0_i32 = arith.constant 0 : i32
    %c0_i32_0 = arith.constant 0 : i32
    %c0_i32_1 = arith.constant 0 : i32
    return %c0_i32, %c0_i32_0 : i32, i32
  }
  func.func @transform_3(%arg0: i32) -> (i32, i32) {
    %c0_i32 = arith.constant 0 : i32
    %c0_i32_0 = arith.constant 0 : i32
    %c0_i32_1 = arith.constant 0 : i32
    return %c0_i32, %c0_i32_0 : i32, i32
  }
  func.func @transform_4(%arg0: i32) -> (i32, i32) {
    %c0_i32 = arith.constant 0 : i32
    %c0_i32_0 = arith.constant 0 : i32
    %c0_i32_1 = arith.constant 0 : i32
    return %c0_i32, %c0_i32_0 : i32, i32
  }
  func.func @transform_5(%arg0: i32) -> (i32, i32) {
    %c0_i32 = arith.constant 0 : i32
    %c0_i32_0 = arith.constant 0 : i32
    %c0_i32_1 = arith.constant 0 : i32
    return %c0_i32, %c0_i32_0 : i32, i32
  }
  func.func @transform_6(%arg0: i32) -> (i32, i32) {
    %c0_i32 = arith.constant 0 : i32
    %c0_i32_0 = arith.constant 0 : i32
    %c0_i32_1 = arith.constant 0 : i32
    return %c0_i32, %c0_i32_0 : i32, i32
  }
  func.func @transform_7(%arg0: i32) -> (i32, i32) {
    %c0_i32 = arith.constant 0 : i32
    %c0_i32_0 = arith.constant 0 : i32
    return %c0_i32, %arg0 : i32, i32
  }
}

module attributes {stable_mosaic.version = 11 : i64} {
  func.func @kernel(%arg0: i32, %arg1: memref<16x16xf32, #tpu.memory_space<vmem>>, %arg2: memref<32x16xf32, #tpu.memory_space<vmem>>, %arg3: memref<32x1xf32, #tpu.memory_space<vmem>>, %arg4: memref<32x32xf32, #tpu.memory_space<vmem>>, %arg5: memref<32x1xf32, #tpu.memory_space<vmem>>, %arg6: memref<32x1xf32, #tpu.memory_space<vmem>>, %arg7: memref<1x1xf32, #tpu.memory_space<vmem>>, %arg8: memref<1x16xf32, #tpu.memory_space<vmem>>) attributes {dimension_semantics = [#tpu.dimension_semantics<parallel>], iteration_bounds = array<i64: 1>, scalar_prefetch = 0 : i64, scratch_operands = 0 : i64, tpu.core_type = #tpu.core_type<tc>, window_params = [{transform_indices = @transform_0, window_bounds = array<i64: 16, 16>}, {pipeline_mode = #tpu.pipeline_mode<synchronous>, transform_indices = @transform_1, window_bounds = array<i64: 32, 16>}, {pipeline_mode = #tpu.pipeline_mode<synchronous>, transform_indices = @transform_2, window_bounds = array<i64: 32, 1>}, {pipeline_mode = #tpu.pipeline_mode<synchronous>, transform_indices = @transform_3, window_bounds = array<i64: 32, 32>}, {pipeline_mode = #tpu.pipeline_mode<synchronous>, transform_indices = @transform_4, window_bounds = array<i64: 32, 1>}, {pipeline_mode = #tpu.pipeline_mode<synchronous>, transform_indices = @transform_5, window_bounds = array<i64: 32, 1>}, {pipeline_mode = #tpu.pipeline_mode<synchronous>, transform_indices = @transform_6, window_bounds = array<i64: 1, 1>}, {transform_indices = @transform_7, window_bounds = array<i64: 1, 16>}]} {
    %c0 = arith.constant 0 : index
    %c0_0 = arith.constant 0 : index
    %0 = vector.load %arg1[%c0, %c0_0] : memref<16x16xf32, #tpu.memory_space<vmem>>, vector<16x16xf32>
    %c0_1 = arith.constant 0 : index
    %c0_2 = arith.constant 0 : index
    %1 = vector.load %arg2[%c0_1, %c0_2] : memref<32x16xf32, #tpu.memory_space<vmem>>, vector<32x16xf32>
    %cst = arith.constant dense<0.000000e+00> : vector<32x16xf32>
    %2 = tpu.matmul %1, %0, %cst {dimension_numbers = #tpu.dot_dimension_numbers<[1], [1], [0], [0], [0, 0, 1, 0], [], []>} : vector<32x16xf32>, vector<16x16xf32>, vector<32x16xf32> -> vector<32x16xf32>
    %c0_3 = arith.constant 0 : index
    %c0_4 = arith.constant 0 : index
    %3 = vector.load %arg3[%c0_3, %c0_4] : memref<32x1xf32, #tpu.memory_space<vmem>>, vector<32x1xf32>
    %4 = vector.broadcast %3 : vector<32x1xf32> to vector<32x16xf32>
    %5 = arith.addf %2, %4 : vector<32x16xf32>
    %cst_5 = arith.constant 0.000000e+00 : f32
    %6 = vector.broadcast %cst_5 : f32 to vector<32x16xf32>
    %7 = arith.maximumf %5, %6 : vector<32x16xf32>
    %c0_6 = arith.constant 0 : index
    %c0_7 = arith.constant 0 : index
    %8 = vector.load %arg4[%c0_6, %c0_7] : memref<32x32xf32, #tpu.memory_space<vmem>>, vector<32x32xf32>
    %cst_8 = arith.constant dense<0.000000e+00> : vector<32x16xf32>
    %9 = tpu.matmul %8, %7, %cst_8 {dimension_numbers = #tpu.dot_dimension_numbers<[1], [0], [0], [1], [0, 0, 1, 1], [], []>} : vector<32x32xf32>, vector<32x16xf32>, vector<32x16xf32> -> vector<32x16xf32>
    %c0_9 = arith.constant 0 : index
    %c0_10 = arith.constant 0 : index
    %10 = vector.load %arg5[%c0_9, %c0_10] : memref<32x1xf32, #tpu.memory_space<vmem>>, vector<32x1xf32>
    %11 = vector.broadcast %10 : vector<32x1xf32> to vector<32x16xf32>
    %12 = arith.addf %9, %11 : vector<32x16xf32>
    %cst_11 = arith.constant 0.000000e+00 : f32
    %13 = vector.broadcast %cst_11 : f32 to vector<32x16xf32>
    %14 = arith.maximumf %12, %13 : vector<32x16xf32>
    %c0_12 = arith.constant 0 : index
    %c0_13 = arith.constant 0 : index
    %15 = vector.load %arg6[%c0_12, %c0_13] : memref<32x1xf32, #tpu.memory_space<vmem>>, vector<32x1xf32>
    %16 = vector.broadcast %15 : vector<32x1xf32> to vector<32x16xf32>
    %17 = arith.mulf %14, %16 : vector<32x16xf32>
    %cst_14 = arith.constant dense<0.000000e+00> : vector<16xf32>
    %18 = vector.multi_reduction <add>, %17, %cst_14 [0] : vector<32x16xf32> to vector<16xf32>
    %19 = vector.shape_cast %18 : vector<16xf32> to vector<1x16xf32>
    %c0_15 = arith.constant 0 : index
    %c0_16 = arith.constant 0 : index
    %20 = vector.load %arg7[%c0_15, %c0_16] : memref<1x1xf32, #tpu.memory_space<vmem>>, vector<1x1xf32>
    %21 = vector.broadcast %20 : vector<1x1xf32> to vector<1x16xf32>
    %22 = arith.addf %19, %21 : vector<1x16xf32>
    %c0_17 = arith.constant 0 : index
    %c0_18 = arith.constant 0 : index
    %23 = vector.load %arg8[%c0_17, %c0_18] : memref<1x16xf32, #tpu.memory_space<vmem>>, vector<1x16xf32>
    tpu.vector_store %arg8[%c0_17, %c0_18], %22 {strides = array<i32>} : memref<1x16xf32, #tpu.memory_space<vmem>>, vector<1x16xf32>,
    return
  }
  func.func @transform_0(%arg0: i32) -> (i32, i32) {
    %c0_i32 = arith.constant 0 : i32
    %c0_i32_0 = arith.constant 0 : i32
    return %arg0, %c0_i32 : i32, i32
  }
  func.func @transform_1(%arg0: i32) -> (i32, i32) {
    %c0_i32 = arith.constant 0 : i32
    %c0_i32_0 = arith.constant 0 : i32
    %c0_i32_1 = arith.constant 0 : i32
    return %c0_i32, %c0_i32_0 : i32, i32
  }
  func.func @transform_2(%arg0: i32) -> (i32, i32) {
    %c0_i32 = arith.constant 0 : i32
    %c0_i32_0 = arith.constant 0 : i32
    %c0_i32_1 = arith.constant 0 : i32
    return %c0_i32, %c0_i32_0 : i32, i32
  }
  func.func @transform_3(%arg0: i32) -> (i32, i32) {
    %c0_i32 = arith.constant 0 : i32
    %c0_i32_0 = arith.constant 0 : i32
    %c0_i32_1 = arith.constant 0 : i32
    return %c0_i32, %c0_i32_0 : i32, i32
  }
  func.func @transform_4(%arg0: i32) -> (i32, i32) {
    %c0_i32 = arith.constant 0 : i32
    %c0_i32_0 = arith.constant 0 : i32
    %c0_i32_1 = arith.constant 0 : i32
    return %c0_i32, %c0_i32_0 : i32, i32
  }
  func.func @transform_5(%arg0: i32) -> (i32, i32) {
    %c0_i32 = arith.constant 0 : i32
    %c0_i32_0 = arith.constant 0 : i32
    %c0_i32_1 = arith.constant 0 : i32
    return %c0_i32, %c0_i32_0 : i32, i32
  }
  func.func @transform_6(%arg0: i32) -> (i32, i32) {
    %c0_i32 = arith.constant 0 : i32
    %c0_i32_0 = arith.constant 0 : i32
    %c0_i32_1 = arith.constant 0 : i32
    return %c0_i32, %c0_i32_0 : i32, i32
  }
  func.func @transform_7(%arg0: i32) -> (i32, i32) {
    %c0_i32 = arith.constant 0 : i32
    %c0_i32_0 = arith.constant 0 : i32
    return %c0_i32, %arg0 : i32, i32
  }
}

</mosaic_0001>

<bundles_post_ra>
// kernel: tpu_custom_call.1
= control target key start
LH: loop header
LB: loop body
LE: loop exit
PB: predicated region body
PF: predicated region fallthrough
CT: control target
= control target key end

     0   :  { %s610_s0 = inlined_call_operand.vmem [shape: f32[16,16], index: 0, kind: input, shape index: {}]   ;;  %s611_s1 = inlined_call_operand.vmem [shape: f32[32,16], index: 1, kind: input, shape index: {}]   ;;  %s612_s2 = inlined_call_operand.vmem [shape: f32[32,1], index: 2, kind: input, shape index: {}]   ;;  %s613_s3 = inlined_call_operand.vmem [shape: f32[32,32], index: 3, kind: input, shape index: {}]   ;;  %s614_s4 = inlined_call_operand.vmem [shape: f32[32,1], index: 4, kind: input, shape index: {}]   ;;  %s615_s5 = inlined_call_operand.vmem [shape: f32[1,32], index: 5, kind: input, shape index: {}]   ;;  %s616_s6 = inlined_call_operand.<no memory space> [shape: f32[1,1], index: 6, kind: input, shape index: {}]   ;;  %s617_s7 = inlined_call_operand.hbm [shape: f32[1,16], index: 7, kind: output, shape index: {}]  }
   0x1   :  { %v12_v0 = vstv %s616_s6 }
   0x2   :  { %13 = vst [vmem:[#allocation2] sm:$0x1] %v12_v0 }
   0x3   :  { %v30_v1 = vld [vmem:[%s610_s0 + $0x8] sm:$0xff]  ;;  %vm59_vm0 = vcmask 130048   ;;  %v29_v2 = vld [vmem:[%s610_s0] sm:$0xff]  ;;  %v490_v4 = vmov 0   ;;  %v38_v5 = vld [vmem:[%s612_s2 + $0x18] sm:$0xff] }
   0x4   :  { %v31_v3 = vld [vmem:[%s611_s1] sm:$0xff]  ;;  %427 = vmatprep.subr.msk.mxu0 %vm59_vm0, %v30_v1  ;;  %466 = vset.pattern.permute.xlu0 %v490_v4  ;;  %v36_v6 = vld [vmem:[%s612_s2 + $0x8] sm:$0xff]  ;;  %v37_v7 = vld [vmem:[%s612_s2 + $0x10] sm:$0xff] }
   0x5   :  { %431 = vmatprep.mubr.msk.f32.mxu0 %vm59_vm0, %v31_v3  ;;  %428 = vmatpush3.xpose.msk.msra.mxu0 %vm59_vm0, %v30_v1 }
   0x6   :  { %429 = vmatprep.subr.msk.mxu0 %vm59_vm0, %v29_v2  ;;  %56 = vperm.xlu0 %466, %v38_v5  }
   0x7   :  { %467 = vset.pattern.permute.xlu1 %v490_v4 }
   0x8   :  { %46 = vperm.xlu1 %467, %v36_v6  }
   0x9   :  { %14 = vsyncpa [#allocation4], 0  ;;  %430 = vmatpush3.xpose.msk.msra.mxu0 %vm59_vm0, %v29_v2  ;;  %v32_v8 = vld [vmem:[%s611_s1 + $0x8] sm:$0xff]  ;;  %v35_v9 = vld [vmem:[%s612_s2] sm:$0xff]  ;;  %vm195_vm1 = vcmask 261120   ;;  %v491_v37 = vmov 0.0   ;;  %v304_v55 = vlaneseq }
   0xa   :  { %v33_v10 = vld [vmem:[%s611_s1 + $0x10] sm:$0xff]  ;;  %51 = vperm.xlu0 %466, %v37_v7   ;;  %v174_v11 = vld [vmem:[%s614_s4 + $0x18] sm:$0xff]  ;;  %v172_v14 = vld [vmem:[%s614_s4 + $0x8] sm:$0xff]  ;;  %451 = vmatprep.subr.mxu0 %v491_v37  ;;  %vm492_vm2 = vmmov 0   ;;  %s493_s10 = smov [#allocation3]   ;;  %vm381_vm3 = vcmask 122880  }
   0xb   :  { %v34_v12 = vld [vmem:[%s611_s1 + $0x18] sm:$0xff]  ;;  %v173_v13 = vld [vmem:[%s614_s4 + $0x10] sm:$0xff]  ;;  %v171_v15 = vld [vmem:[%s614_s4] sm:$0xff]  ;;  %v305_v56 = vshrl.u32 %v304_v55, 7  ;;  %s389_s11 = sshll.u32 %s493_s10, 4  ;;  %s390_s11 = int_to_ptr.vmem [resolvable:$true] %s389_s11 }
   0xc   :  { %432 = vmatmul.mubr.msk.f32.vlgmr.msra.gmra.mxu0 %vm59_vm0, %v32_v8  ;;  %41 = vperm.xlu1 %467, %v35_v9   ;;  %v298_v16 = vld [vmem:[#allocation2] sm:$0x1]  ;;  %v168_v34 = vld [vmem:[%s613_s3 + $0x8] sm:$0xff]  ;;  %v169_v35 = vld [vmem:[%s613_s3 + $0x10] sm:$0xff]  ;;  %s468_s12 = scalar_lea.vmem %s390_s11, 16  ;;  %p473_p1 = scmp.lt.s32.totalorder %s390_s11, %s390_s11 }
   0xd   :  { %434 = vmatprep.mubr.msk.f32.mxu0 %vm59_vm0, %v33_v10  ;;  %v167_v17 = vld [vmem:[%s613_s3] sm:$0xff]  ;;  %v170_v36 = vld [vmem:[%s613_s3 + $0x18] sm:$0xff]  ;;  %v306_v57 = vsub.s32 0, %v305_v56  ;;  %p469_p0 = scmp.ne.s32.totalorder %s390_s11, %s468_s12 }
   0xe   :  { %192 = vperm.xlu0 %466, %v174_v11   ;;  %445 = vmatprep.mubr.msk.f32.mxu1 %vm195_vm1, %v167_v17  ;;  %v297_v54 = vld [vmem:[%s615_s5] sm:$0x1]  ;;  %s472_s5 = scalar_lea.vmem %s390_s11, 32 }
   0xf   :  { %p474_p2 = scmp.lt.s32.totalorder %s472_s5, %s468_s12 }
  0x10   :  { %435 = vmatmul.mubr.msk.f32.gmra.mxu0 %vm59_vm0, %v34_v12  ;;  %187 = vperm.xlu1 %467, %v173_v13  }
  0x11   :  { %459 = vmatprep.mubr.msk.f32.mxu0 %vm492_vm2, %v491_v37  ;;  %p475_p3 = por %p474_p2, %p473_p1 }
  0x12   :  { %182 = vperm.xlu0 %466, %v172_v14  }
  0x13   :  { %p476_p4 = pnand %p475_p3, %p469_p0 }
  0x14   :  { %177 = vperm.xlu1 %467, %v171_v15  }
  0x16   :  { %301 = vperm.xlu0 %466, %v298_v16  }
  0x81   :  { %v57_v18 = vpop.permute.xlu0 %56 }
  0x83   :  { %v47_v20 = vpop.permute.xlu1 %46 }
  0x85   :  { %v52_v24 = vpop.permute.xlu0 %51 }
  0x87   :  { %v42_v29 = vpop.permute.xlu1 %41 }
  0x89   :  { %v193_v38 = vpop.permute.xlu0 %192 }
  0x8b   :  { %v188_v40 = vpop.permute.xlu1 %187 }
  0x8d   :  { %v183_v44 = vpop.permute.xlu0 %182 }
  0x8f   :  { %v178_v49 = vpop.permute.xlu1 %177 }
  0x91   :  { %v302_v58 = vpop.permute.xlu0 %301 }
  0x92   :  { %v307_v59 = vrot.slane %v302_v58, %v306_v57 }
  0xcc   :  { %v433_v19 = vpop.f32.mrf.mxu0 }
  0xcd   :  { %v150_v26 = vadd.f32 %v433_v19, %v47_v20 }
  0xce   :  { %v144_v21 = vpop.f32.mrf.mxu0 }
  0xcf   :  { %v145_v30 = vadd.f32 %v144_v21, %v42_v29  ;;  %v164_v32 = vmax.f32 %v150_v26, 0.0 }
  0xd0   :  { %v436_v22 = vpop.f32.mrf.mxu0 }
  0xd1   :  { %v160_v23 = vadd.f32 %v436_v22, %v57_v18  ;;  %v163_v33 = vmax.f32 %v145_v30, 0.0 }
  0xd2   :  { %v154_v25 = vpop.f32.mrf.mxu0 }
  0xd3   :  { %v166_v27 = vmax.f32 %v160_v23, 0.0  ;;  %v155_v28 = vadd.f32 %v154_v25, %v52_v24 }
  0xd5   :  { %v165_v31 = vmax.f32 %v155_v28, 0.0  ;;  %437 = vmatprep.subr.mxu1 %v166_v27 }
  0xd6   :  { %438 = vmatpush3.msra.mxu1 %v166_v27 }
  0xd7   :  { %439 = vmatprep.subr.mxu1 %v165_v31 }
  0xd8   :  { %440 = vmatpush3.msra.mxu1 %v165_v31 }
  0xd9   :  { %441 = vmatprep.subr.mxu1 %v164_v32 }
  0xda   :  { %442 = vmatpush3.msra.mxu1 %v164_v32 }
  0xdb   :  { %443 = vmatprep.subr.mxu1 %v163_v33 }
  0xdc   :  { %444 = vmatpush3.msra.mxu1 %v163_v33 }
  0xdd   :  { %446 = vmatmul.mubr.msk.f32.vlgmr.msra.gmra.mxu1 %vm195_vm1, %v168_v34 }
  0xde   :  { %448 = vmatprep.mubr.msk.f32.mxu1 %vm195_vm1, %v169_v35 }
  0xe1   :  { %449 = vmatmul.mubr.msk.f32.gmra.mxu1 %vm195_vm1, %v170_v36 }
 0x19d   :  { %v447_v39 = vpop.f32.mrf.mxu1 }
 0x19e   :  { %v280_v46 = vadd.f32 %v447_v39, %v183_v44 }
 0x19f   :  { %v274_v41 = vpop.f32.mrf.mxu1 }
 0x1a0   :  { %v275_v50 = vadd.f32 %v274_v41, %v178_v49  ;;  %v294_v52 = vmax.f32 %v280_v46, 0.0 }
 0x1a1   :  { %v450_v42 = vpop.f32.mrf.mxu1 }
 0x1a2   :  { %v290_v43 = vadd.f32 %v450_v42, %v193_v38  ;;  %v293_v53 = vmax.f32 %v275_v50, 0.0 }
 0x1a3   :  { %v284_v45 = vpop.f32.mrf.mxu1 }
 0x1a4   :  { %v296_v47 = vmax.f32 %v290_v43, 0.0  ;;  %v285_v48 = vadd.f32 %v284_v45, %v188_v40 }
 0x1a6   :  { %v295_v51 = vmax.f32 %v285_v48, 0.0  ;;  %452 = vmatpush3.msra.mxu0 %v296_v47 }
 0x1a7   :  { %453 = vmatprep.subr.mxu0 %v491_v37 }
 0x1a8   :  { %454 = vmatpush3.msra.mxu0 %v295_v51 }
 0x1a9   :  { %455 = vmatprep.subr.mxu0 %v491_v37 }
 0x1aa   :  { %456 = vmatpush3.msra.mxu0 %v294_v52 }
 0x1ab   :  { %457 = vmatprep.subr.mxu0 %v491_v37 }
 0x1ac   :  { %458 = vmatpush3.msra.mxu0 %v293_v53 }
 0x1ad   :  { %460 = vmatmul.mubr.msk.f32.vlgmr.msra.gmra.mxu0 %vm195_vm1, %v297_v54 }
 0x26d   :  { %v377_v60 = vpop.f32.mrf.mxu0 }
 0x26e   :  { %v378_v61 = vadd.f32 %v377_v60, %v307_v59 }
 0x26f   :  { %v461_v62 = vpop.f32.mrf.mxu0 }
 0x270   :  { %382 = vst.msk [vmem:[#allocation3] sm:$0x1] %vm381_vm3, %v378_v61 }
 0x271   :  { %479 = shalt.err (!%p476_p4)
}
 0x272   :  { %392 = dma.vmem_to_hbm [thread:$0]  %s390_s11, 16, %s617_s7, [#allocation4]  }
 0x273   :  { %488 = dma.done.wait [#allocation4], 16  }
 0x274   :  { %489 = vsyncadd [#allocation4], 4294967280 }
 0x275   :  { %396 = vsyncpa [#allocation4], 1 }

// kernel: tpu_custom_call.1
= control target key start
LH: loop header
LB: loop body
LE: loop exit
PB: predicated region body
PF: predicated region fallthrough
CT: control target
= control target key end

     0   :  { %s610_s0 = inlined_call_operand.vmem [shape: f32[16,16], index: 0, kind: input, shape index: {}]   ;;  %s611_s1 = inlined_call_operand.vmem [shape: f32[32,16], index: 1, kind: input, shape index: {}]   ;;  %s612_s2 = inlined_call_operand.vmem [shape: f32[32,1], index: 2, kind: input, shape index: {}]   ;;  %s613_s3 = inlined_call_operand.vmem [shape: f32[32,32], index: 3, kind: input, shape index: {}]   ;;  %s614_s4 = inlined_call_operand.vmem [shape: f32[32,1], index: 4, kind: input, shape index: {}]   ;;  %s615_s5 = inlined_call_operand.vmem [shape: f32[1,32], index: 5, kind: input, shape index: {}]   ;;  %s616_s6 = inlined_call_operand.<no memory space> [shape: f32[1,1], index: 6, kind: input, shape index: {}]   ;;  %s617_s7 = inlined_call_operand.hbm [shape: f32[1,16], index: 7, kind: output, shape index: {}]  }
   0x1   :  { %v12_v0 = vstv %s616_s6 }
   0x2   :  { %13 = vst [vmem:[#allocation2] sm:$0x1] %v12_v0 }
   0x3   :  { %v30_v1 = vld [vmem:[%s610_s0 + $0x8] sm:$0xff]  ;;  %vm59_vm0 = vcmask 130048   ;;  %v29_v2 = vld [vmem:[%s610_s0] sm:$0xff]  ;;  %v490_v4 = vmov 0   ;;  %v38_v5 = vld [vmem:[%s612_s2 + $0x18] sm:$0xff] }
   0x4   :  { %v31_v3 = vld [vmem:[%s611_s1] sm:$0xff]  ;;  %427 = vmatprep.subr.msk.mxu0 %vm59_vm0, %v30_v1  ;;  %466 = vset.pattern.permute.xlu0 %v490_v4  ;;  %v36_v6 = vld [vmem:[%s612_s2 + $0x8] sm:$0xff]  ;;  %v37_v7 = vld [vmem:[%s612_s2 + $0x10] sm:$0xff] }
   0x5   :  { %431 = vmatprep.mubr.msk.f32.mxu0 %vm59_vm0, %v31_v3  ;;  %428 = vmatpush3.xpose.msk.msra.mxu0 %vm59_vm0, %v30_v1 }
   0x6   :  { %429 = vmatprep.subr.msk.mxu0 %vm59_vm0, %v29_v2  ;;  %56 = vperm.xlu0 %466, %v38_v5  }
   0x7   :  { %467 = vset.pattern.permute.xlu1 %v490_v4 }
   0x8   :  { %46 = vperm.xlu1 %467, %v36_v6  }
   0x9   :  { %14 = vsyncpa [#allocation4], 0  ;;  %430 = vmatpush3.xpose.msk.msra.mxu0 %vm59_vm0, %v29_v2  ;;  %v32_v8 = vld [vmem:[%s611_s1 + $0x8] sm:$0xff]  ;;  %v35_v9 = vld [vmem:[%s612_s2] sm:$0xff]  ;;  %vm195_vm1 = vcmask 261120   ;;  %v491_v37 = vmov 0.0   ;;  %v304_v55 = vlaneseq }
   0xa   :  { %v33_v10 = vld [vmem:[%s611_s1 + $0x10] sm:$0xff]  ;;  %51 = vperm.xlu0 %466, %v37_v7   ;;  %v174_v11 = vld [vmem:[%s614_s4 + $0x18] sm:$0xff]  ;;  %v172_v14 = vld [vmem:[%s614_s4 + $0x8] sm:$0xff]  ;;  %451 = vmatprep.subr.mxu0 %v491_v37  ;;  %vm492_vm2 = vmmov 0   ;;  %s493_s10 = smov [#allocation3]   ;;  %vm381_vm3 = vcmask 122880  }
   0xb   :  { %v34_v12 = vld [vmem:[%s611_s1 + $0x18] sm:$0xff]  ;;  %v173_v13 = vld [vmem:[%s614_s4 + $0x10] sm:$0xff]  ;;  %v171_v15 = vld [vmem:[%s614_s4] sm:$0xff]  ;;  %v305_v56 = vshrl.u32 %v304_v55, 7  ;;  %s389_s11 = sshll.u32 %s493_s10, 4  ;;  %s390_s11 = int_to_ptr.vmem [resolvable:$true] %s389_s11 }
   0xc   :  { %432 = vmatmul.mubr.msk.f32.vlgmr.msra.gmra.mxu0 %vm59_vm0, %v32_v8  ;;  %41 = vperm.xlu1 %467, %v35_v9   ;;  %v298_v16 = vld [vmem:[#allocation2] sm:$0x1]  ;;  %v168_v34 = vld [vmem:[%s613_s3 + $0x8] sm:$0xff]  ;;  %v169_v35 = vld [vmem:[%s613_s3 + $0x10] sm:$0xff]  ;;  %s468_s12 = scalar_lea.vmem %s390_s11, 16  ;;  %p473_p1 = scmp.lt.s32.totalorder %s390_s11, %s390_s11 }
   0xd   :  { %434 = vmatprep.mubr.msk.f32.mxu0 %vm59_vm0, %v33_v10  ;;  %v167_v17 = vld [vmem:[%s613_s3] sm:$0xff]  ;;  %v170_v36 = vld [vmem:[%s613_s3 + $0x18] sm:$0xff]  ;;  %v306_v57 = vsub.s32 0, %v305_v56  ;;  %p469_p0 = scmp.ne.s32.totalorder %s390_s11, %s468_s12 }
   0xe   :  { %192 = vperm.xlu0 %466, %v174_v11   ;;  %445 = vmatprep.mubr.msk.f32.mxu1 %vm195_vm1, %v167_v17  ;;  %v297_v54 = vld [vmem:[%s615_s5] sm:$0x1]  ;;  %s472_s5 = scalar_lea.vmem %s390_s11, 32 }
   0xf   :  { %p474_p2 = scmp.lt.s32.totalorder %s472_s5, %s468_s12 }
  0x10   :  { %435 = vmatmul.mubr.msk.f32.gmra.mxu0 %vm59_vm0, %v34_v12  ;;  %187 = vperm.xlu1 %467, %v173_v13  }
  0x11   :  { %459 = vmatprep.mubr.msk.f32.mxu0 %vm492_vm2, %v491_v37  ;;  %p475_p3 = por %p474_p2, %p473_p1 }
  0x12   :  { %182 = vperm.xlu0 %466, %v172_v14  }
  0x13   :  { %p476_p4 = pnand %p475_p3, %p469_p0 }
  0x14   :  { %177 = vperm.xlu1 %467, %v171_v15  }
  0x16   :  { %301 = vperm.xlu0 %466, %v298_v16  }
  0x81   :  { %v57_v18 = vpop.permute.xlu0 %56 }
  0x83   :  { %v47_v20 = vpop.permute.xlu1 %46 }
  0x85   :  { %v52_v24 = vpop.permute.xlu0 %51 }
  0x87   :  { %v42_v29 = vpop.permute.xlu1 %41 }
  0x89   :  { %v193_v38 = vpop.permute.xlu0 %192 }
  0x8b   :  { %v188_v40 = vpop.permute.xlu1 %187 }
  0x8d   :  { %v183_v44 = vpop.permute.xlu0 %182 }
  0x8f   :  { %v178_v49 = vpop.permute.xlu1 %177 }
  0x91   :  { %v302_v58 = vpop.permute.xlu0 %301 }
  0x92   :  { %v307_v59 = vrot.slane %v302_v58, %v306_v57 }
  0xcc   :  { %v433_v19 = vpop.f32.mrf.mxu0 }
  0xcd   :  { %v150_v26 = vadd.f32 %v433_v19, %v47_v20 }
  0xce   :  { %v144_v21 = vpop.f32.mrf.mxu0 }
  0xcf   :  { %v145_v30 = vadd.f32 %v144_v21, %v42_v29  ;;  %v164_v32 = vmax.f32 %v150_v26, 0.0 }
  0xd0   :  { %v436_v22 = vpop.f32.mrf.mxu0 }
  0xd1   :  { %v160_v23 = vadd.f32 %v436_v22, %v57_v18  ;;  %v163_v33 = vmax.f32 %v145_v30, 0.0 }
  0xd2   :  { %v154_v25 = vpop.f32.mrf.mxu0 }
  0xd3   :  { %v166_v27 = vmax.f32 %v160_v23, 0.0  ;;  %v155_v28 = vadd.f32 %v154_v25, %v52_v24 }
  0xd5   :  { %v165_v31 = vmax.f32 %v155_v28, 0.0  ;;  %437 = vmatprep.subr.mxu1 %v166_v27 }
  0xd6   :  { %438 = vmatpush3.msra.mxu1 %v166_v27 }
  0xd7   :  { %439 = vmatprep.subr.mxu1 %v165_v31 }
  0xd8   :  { %440 = vmatpush3.msra.mxu1 %v165_v31 }
  0xd9   :  { %441 = vmatprep.subr.mxu1 %v164_v32 }
  0xda   :  { %442 = vmatpush3.msra.mxu1 %v164_v32 }
  0xdb   :  { %443 = vmatprep.subr.mxu1 %v163_v33 }
  0xdc   :  { %444 = vmatpush3.msra.mxu1 %v163_v33 }
  0xdd   :  { %446 = vmatmul.mubr.msk.f32.vlgmr.msra.gmra.mxu1 %vm195_vm1, %v168_v34 }
  0xde   :  { %448 = vmatprep.mubr.msk.f32.mxu1 %vm195_vm1, %v169_v35 }
  0xe1   :  { %449 = vmatmul.mubr.msk.f32.gmra.mxu1 %vm195_vm1, %v170_v36 }
 0x19d   :  { %v447_v39 = vpop.f32.mrf.mxu1 }
 0x19e   :  { %v280_v46 = vadd.f32 %v447_v39, %v183_v44 }
 0x19f   :  { %v274_v41 = vpop.f32.mrf.mxu1 }
 0x1a0   :  { %v275_v50 = vadd.f32 %v274_v41, %v178_v49  ;;  %v294_v52 = vmax.f32 %v280_v46, 0.0 }
 0x1a1   :  { %v450_v42 = vpop.f32.mrf.mxu1 }
 0x1a2   :  { %v290_v43 = vadd.f32 %v450_v42, %v193_v38  ;;  %v293_v53 = vmax.f32 %v275_v50, 0.0 }
 0x1a3   :  { %v284_v45 = vpop.f32.mrf.mxu1 }
 0x1a4   :  { %v296_v47 = vmax.f32 %v290_v43, 0.0  ;;  %v285_v48 = vadd.f32 %v284_v45, %v188_v40 }
 0x1a6   :  { %v295_v51 = vmax.f32 %v285_v48, 0.0  ;;  %452 = vmatpush3.msra.mxu0 %v296_v47 }
 0x1a7   :  { %453 = vmatprep.subr.mxu0 %v491_v37 }
 0x1a8   :  { %454 = vmatpush3.msra.mxu0 %v295_v51 }
 0x1a9   :  { %455 = vmatprep.subr.mxu0 %v491_v37 }
 0x1aa   :  { %456 = vmatpush3.msra.mxu0 %v294_v52 }
 0x1ab   :  { %457 = vmatprep.subr.mxu0 %v491_v37 }
 0x1ac   :  { %458 = vmatpush3.msra.mxu0 %v293_v53 }
 0x1ad   :  { %460 = vmatmul.mubr.msk.f32.vlgmr.msra.gmra.mxu0 %vm195_vm1, %v297_v54 }
 0x26d   :  { %v377_v60 = vpop.f32.mrf.mxu0 }
 0x26e   :  { %v378_v61 = vadd.f32 %v377_v60, %v307_v59 }
 0x26f   :  { %v461_v62 = vpop.f32.mrf.mxu0 }
 0x270   :  { %382 = vst.msk [vmem:[#allocation3] sm:$0x1] %vm381_vm3, %v378_v61 }
 0x271   :  { %479 = shalt.err (!%p476_p4)
}
 0x272   :  { %392 = dma.vmem_to_hbm [thread:$0]  %s390_s11, 16, %s617_s7, [#allocation4]  }
 0x273   :  { %488 = dma.done.wait [#allocation4], 16  }
 0x274   :  { %489 = vsyncadd [#allocation4], 4294967280 }
 0x275   :  { %396 = vsyncpa [#allocation4], 1 }

// kernel: tpu_custom_call.1
= control target key start
LH: loop header
LB: loop body
LE: loop exit
PB: predicated region body
PF: predicated region fallthrough
CT: control target
= control target key end

     0   :  { %s569_s0 = inlined_call_operand.vmem [shape: f32[16,16], index: 0, kind: input, shape index: {}]   ;;  %s570_s1 = inlined_call_operand.vmem [shape: f32[32,16], index: 1, kind: input, shape index: {}]   ;;  %s571_s2 = inlined_call_operand.vmem [shape: f32[32,1], index: 2, kind: input, shape index: {}]   ;;  %s572_s3 = inlined_call_operand.vmem [shape: f32[32,32], index: 3, kind: input, shape index: {}]   ;;  %s573_s4 = inlined_call_operand.vmem [shape: f32[32,1], index: 4, kind: input, shape index: {}]   ;;  %s574_s5 = inlined_call_operand.vmem [shape: f32[32,1], index: 5, kind: input, shape index: {}]   ;;  %s575_s6 = inlined_call_operand.<no memory space> [shape: f32[1,1], index: 6, kind: input, shape index: {}]   ;;  %s576_s7 = inlined_call_operand.hbm [shape: f32[1,16], index: 7, kind: output, shape index: {}]  }
   0x1   :  { %v12_v0 = vstv %s575_s6 }
   0x2   :  { %13 = vst [vmem:[#allocation2] sm:$0x1] %v12_v0 }
   0x3   :  { %v30_v1 = vld [vmem:[%s569_s0 + $0x8] sm:$0xff]  ;;  %vm59_vm0 = vcmask 130048   ;;  %v29_v2 = vld [vmem:[%s569_s0] sm:$0xff]  ;;  %v439_v4 = vmov 0   ;;  %v38_v5 = vld [vmem:[%s571_s2 + $0x18] sm:$0xff] }
   0x4   :  { %v31_v3 = vld [vmem:[%s570_s1] sm:$0xff]  ;;  %389 = vmatprep.subr.msk.mxu0 %vm59_vm0, %v30_v1  ;;  %415 = vset.pattern.permute.xlu0 %v439_v4  ;;  %v36_v6 = vld [vmem:[%s571_s2 + $0x8] sm:$0xff]  ;;  %v37_v7 = vld [vmem:[%s571_s2 + $0x10] sm:$0xff] }
   0x5   :  { %393 = vmatprep.mubr.msk.f32.mxu0 %vm59_vm0, %v31_v3  ;;  %390 = vmatpush3.xpose.msk.msra.mxu0 %vm59_vm0, %v30_v1  ;;  %v32_v8 = vld [vmem:[%s570_s1 + $0x8] sm:$0xff]  ;;  %v35_v9 = vld [vmem:[%s571_s2] sm:$0xff] }
   0x6   :  { %391 = vmatprep.subr.msk.mxu0 %vm59_vm0, %v29_v2  ;;  %56 = vperm.xlu0 %415, %v38_v5  }
   0x7   :  { %416 = vset.pattern.permute.xlu1 %v439_v4 }
   0x8   :  { %46 = vperm.xlu1 %416, %v36_v6  }
   0x9   :  { %392 = vmatpush3.xpose.msk.msra.mxu0 %vm59_vm0, %v29_v2 }
   0xa   :  { %14 = vsyncpa [#allocation4], 0  ;;  %v33_v10 = vld [vmem:[%s570_s1 + $0x10] sm:$0xff]  ;;  %51 = vperm.xlu0 %415, %v37_v7   ;;  %v171_v11 = vld [vmem:[%s573_s4] sm:$0xff]  ;;  %vm195_vm1 = vcmask 261120   ;;  %v344_v7 = vlaneseq  ;;  %vm349_vm2 = vcmask 122880  }
   0xb   :  { %v34_v12 = vld [vmem:[%s570_s1 + $0x18] sm:$0xff]  ;;  %v172_v13 = vld [vmem:[%s573_s4 + $0x8] sm:$0xff]  ;;  %v173_v14 = vld [vmem:[%s573_s4 + $0x10] sm:$0xff] }
   0xc   :  { %394 = vmatmul.mubr.msk.f32.vlgmr.msra.gmra.mxu0 %vm59_vm0, %v32_v8  ;;  %41 = vperm.xlu1 %416, %v35_v9   ;;  %v174_v15 = vld [vmem:[%s573_s4 + $0x18] sm:$0xff]  ;;  %v297_v16 = vld [vmem:[%s574_s5] sm:$0xff]  ;;  %v298_v17 = vld [vmem:[%s574_s5 + $0x8] sm:$0xff] }
   0xd   :  { %396 = vmatprep.mubr.msk.f32.mxu0 %vm59_vm0, %v33_v10  ;;  %v299_v18 = vld [vmem:[%s574_s5 + $0x10] sm:$0xff]  ;;  %v300_v19 = vld [vmem:[%s574_s5 + $0x18] sm:$0xff]  ;;  %v338_v20 = vld [vmem:[#allocation2] sm:$0x1]  ;;  %v345_v10 = vshrl.u32 %v344_v7, 7 }
   0xe   :  { %177 = vperm.xlu0 %415, %v171_v11   ;;  %v167_v21 = vld [vmem:[%s572_s3] sm:$0xff]  ;;  %v168_v38 = vld [vmem:[%s572_s3 + $0x8] sm:$0xff]  ;;  %v169_v39 = vld [vmem:[%s572_s3 + $0x10] sm:$0xff] }
   0xf   :  { %407 = vmatprep.mubr.msk.f32.mxu1 %vm195_vm1, %v167_v21  ;;  %v170_v40 = vld [vmem:[%s572_s3 + $0x18] sm:$0xff]  ;;  %s440_s3 = smov [#allocation3]  }
  0x10   :  { %397 = vmatmul.mubr.msk.f32.gmra.mxu0 %vm59_vm0, %v34_v12  ;;  %182 = vperm.xlu1 %416, %v172_v13   ;;  %v346_v13 = vsub.s32 0, %v345_v10  ;;  %s357_s16 = sshll.u32 %s440_s3, 4  ;;  %s358_s16 = int_to_ptr.vmem [resolvable:$true] %s357_s16 }
  0x11   :  { %s417_s17 = scalar_lea.vmem %s358_s16, 16  ;;  %s421_s18 = scalar_lea.vmem %s358_s16, 32 }
  0x12   :  { %187 = vperm.xlu0 %415, %v173_v14   ;;  %p418_p0 = scmp.ne.s32.totalorder %s358_s16, %s417_s17  ;;  %p422_p1 = scmp.lt.s32.totalorder %s358_s16, %s358_s16 }
  0x13   :  { %p423_p2 = scmp.lt.s32.totalorder %s421_s18, %s417_s17 }
  0x14   :  { %192 = vperm.xlu1 %416, %v174_v15  }
  0x15   :  { %p424_p3 = por %p423_p2, %p422_p1 }
  0x16   :  { %303 = vperm.xlu0 %415, %v297_v16  }
  0x17   :  { %p425_p4 = pnand %p424_p3, %p418_p0 }
  0x18   :  { %308 = vperm.xlu1 %416, %v298_v17  }
  0x1a   :  { %313 = vperm.xlu0 %415, %v299_v18  }
  0x1c   :  { %318 = vperm.xlu1 %416, %v300_v19  }
  0x1e   :  { %341 = vperm.xlu0 %415, %v338_v20  }
  0x81   :  { %v57_v22 = vpop.permute.xlu0 %56 }
  0x83   :  { %v47_v24 = vpop.permute.xlu1 %46 }
  0x85   :  { %v52_v28 = vpop.permute.xlu0 %51 }
  0x87   :  { %v42_v33 = vpop.permute.xlu1 %41 }
  0x89   :  { %v178_v41 = vpop.permute.xlu0 %177 }
  0x8b   :  { %v183_v42 = vpop.permute.xlu1 %182 }
  0x8d   :  { %v188_v43 = vpop.permute.xlu0 %187 }
  0x8f   :  { %v193_v44 = vpop.permute.xlu1 %192 }
  0x91   :  { %v304_v48 = vpop.permute.xlu0 %303 }
  0x93   :  { %v309_v51 = vpop.permute.xlu1 %308 }
  0x95   :  { %v314_v62 = vpop.permute.xlu0 %313 }
  0x97   :  { %v319_v63 = vpop.permute.xlu1 %318 }
  0x99   :  { %v342_v15 = vpop.permute.xlu0 %341 }
  0x9a   :  { %v347_v17 = vrot.slane %v342_v15, %v346_v13 }
  0xcc   :  { %v395_v23 = vpop.f32.mrf.mxu0 }
  0xcd   :  { %v150_v30 = vadd.f32 %v395_v23, %v47_v24 }
  0xce   :  { %v144_v25 = vpop.f32.mrf.mxu0 }
  0xcf   :  { %v145_v34 = vadd.f32 %v144_v25, %v42_v33  ;;  %v164_v36 = vmax.f32 %v150_v30, 0.0 }
  0xd0   :  { %v398_v26 = vpop.f32.mrf.mxu0 }
  0xd1   :  { %v160_v27 = vadd.f32 %v398_v26, %v57_v22  ;;  %v163_v37 = vmax.f32 %v145_v34, 0.0 }
  0xd2   :  { %v154_v29 = vpop.f32.mrf.mxu0 }
  0xd3   :  { %v166_v31 = vmax.f32 %v160_v27, 0.0  ;;  %v155_v32 = vadd.f32 %v154_v29, %v52_v28 }
  0xd5   :  { %v165_v35 = vmax.f32 %v155_v32, 0.0  ;;  %399 = vmatprep.subr.mxu1 %v166_v31 }
  0xd6   :  { %400 = vmatpush3.msra.mxu1 %v166_v31 }
  0xd7   :  { %401 = vmatprep.subr.mxu1 %v165_v35 }
  0xd8   :  { %402 = vmatpush3.msra.mxu1 %v165_v35 }
  0xd9   :  { %403 = vmatprep.subr.mxu1 %v164_v36 }
  0xda   :  { %404 = vmatpush3.msra.mxu1 %v164_v36 }
  0xdb   :  { %405 = vmatprep.subr.mxu1 %v163_v37 }
  0xdc   :  { %406 = vmatpush3.msra.mxu1 %v163_v37 }
  0xdd   :  { %408 = vmatmul.mubr.msk.f32.vlgmr.msra.gmra.mxu1 %vm195_vm1, %v168_v38 }
  0xde   :  { %410 = vmatprep.mubr.msk.f32.mxu1 %vm195_vm1, %v169_v39 }
  0xe1   :  { %411 = vmatmul.mubr.msk.f32.gmra.mxu1 %vm195_vm1, %v170_v40 }
 0x19d   :  { %v409_v45 = vpop.f32.mrf.mxu1 }
 0x19e   :  { %v280_v46 = vadd.f32 %v409_v45, %v183_v42 }
 0x19f   :  { %v274_v47 = vpop.f32.mrf.mxu1 }
 0x1a0   :  { %v294_v49 = vmax.f32 %v280_v46, 0.0  ;;  %v275_v50 = vadd.f32 %v274_v47, %v178_v41 }
 0x1a1   :  { %v412_v52 = vpop.f32.mrf.mxu1 }
 0x1a2   :  { %v293_v53 = vmax.f32 %v275_v50, 0.0  ;;  %v290_v54 = vadd.f32 %v412_v52, %v193_v44  ;;  %v322_v56 = vmul.f32 %v309_v51, %v294_v49 }
 0x1a3   :  { %v284_v55 = vpop.f32.mrf.mxu1 }
 0x1a4   :  { %v321_v57 = vmul.f32 %v304_v48, %v293_v53  ;;  %v296_v58 = vmax.f32 %v290_v54, 0.0  ;;  %v285_v59 = vadd.f32 %v284_v55, %v188_v43  ;;  %v326_v0 = vsel %vm59_vm0, %v322_v56, 0.0 }
 0x1a6   :  { %v325_v60 = vsel %vm59_vm0, %v321_v57, 0.0  ;;  %v295_v61 = vmax.f32 %v285_v59, 0.0  ;;  %v324_v1 = vmul.f32 %v319_v63, %v296_v58 }
 0x1a7   :  { %v327_v3 = vadd.f32 %v326_v0, %v325_v60 }
 0x1a8   :  { %v323_v2 = vmul.f32 %v314_v62, %v295_v61  ;;  %v330_v6 = vsel %vm59_vm0, %v324_v1, 0.0 }
 0x1aa   :  { %v328_v4 = vsel %vm59_vm0, %v323_v2, 0.0 }
 0x1ab   :  { %v329_v5 = vadd.f32 %v328_v4, %v327_v3 }
 0x1ad   :  { %v331_v8 = vadd.f32 %v330_v6, %v329_v5 }
 0x1af   :  { %v332_v9 = vrot.slane %v331_v8, 4 }
 0x1b1   :  { %v333_v11 = vadd.f32 %v332_v9, %v331_v8 }
 0x1b3   :  { %v334_v12 = vrot.slane %v333_v11, 2 }
 0x1b5   :  { %v335_v14 = vadd.f32 %v334_v12, %v333_v11 }
 0x1b7   :  { %v336_v16 = vrot.slane %v335_v14, 1 }
 0x1b9   :  { %v337_v18 = vadd.f32 %v336_v16, %v335_v14 }
 0x1bb   :  { %v348_v19 = vadd.f32 %v347_v17, %v337_v18 }
 0x1bd   :  { %350 = vst.msk [vmem:[#allocation3] sm:$0x1] %vm349_vm2, %v348_v19 }
 0x1be   :  { %428 = shalt.err (!%p425_p4)
}
 0x1bf   :  { %360 = dma.vmem_to_hbm [thread:$0]  %s358_s16, 16, %s576_s7, [#allocation4]  }
 0x1c0   :  { %437 = dma.done.wait [#allocation4], 16  }
 0x1c1   :  { %438 = vsyncadd [#allocation4], 4294967280 }
 0x1c2   :  { %364 = vsyncpa [#allocation4], 1 }

// kernel: tpu_custom_call.1
= control target key start
LH: loop header
LB: loop body
LE: loop exit
PB: predicated region body
PF: predicated region fallthrough
CT: control target
= control target key end

     0   :  { %s569_s0 = inlined_call_operand.vmem [shape: f32[16,16], index: 0, kind: input, shape index: {}]   ;;  %s570_s1 = inlined_call_operand.vmem [shape: f32[32,16], index: 1, kind: input, shape index: {}]   ;;  %s571_s2 = inlined_call_operand.vmem [shape: f32[32,1], index: 2, kind: input, shape index: {}]   ;;  %s572_s3 = inlined_call_operand.vmem [shape: f32[32,32], index: 3, kind: input, shape index: {}]   ;;  %s573_s4 = inlined_call_operand.vmem [shape: f32[32,1], index: 4, kind: input, shape index: {}]   ;;  %s574_s5 = inlined_call_operand.vmem [shape: f32[32,1], index: 5, kind: input, shape index: {}]   ;;  %s575_s6 = inlined_call_operand.<no memory space> [shape: f32[1,1], index: 6, kind: input, shape index: {}]   ;;  %s576_s7 = inlined_call_operand.hbm [shape: f32[1,16], index: 7, kind: output, shape index: {}]  }
   0x1   :  { %v12_v0 = vstv %s575_s6 }
   0x2   :  { %13 = vst [vmem:[#allocation2] sm:$0x1] %v12_v0 }
   0x3   :  { %v30_v1 = vld [vmem:[%s569_s0 + $0x8] sm:$0xff]  ;;  %vm59_vm0 = vcmask 130048   ;;  %v29_v2 = vld [vmem:[%s569_s0] sm:$0xff]  ;;  %v439_v4 = vmov 0   ;;  %v38_v5 = vld [vmem:[%s571_s2 + $0x18] sm:$0xff] }
   0x4   :  { %v31_v3 = vld [vmem:[%s570_s1] sm:$0xff]  ;;  %389 = vmatprep.subr.msk.mxu0 %vm59_vm0, %v30_v1  ;;  %415 = vset.pattern.permute.xlu0 %v439_v4  ;;  %v36_v6 = vld [vmem:[%s571_s2 + $0x8] sm:$0xff]  ;;  %v37_v7 = vld [vmem:[%s571_s2 + $0x10] sm:$0xff] }
   0x5   :  { %393 = vmatprep.mubr.msk.f32.mxu0 %vm59_vm0, %v31_v3  ;;  %390 = vmatpush3.xpose.msk.msra.mxu0 %vm59_vm0, %v30_v1  ;;  %v32_v8 = vld [vmem:[%s570_s1 + $0x8] sm:$0xff]  ;;  %v35_v9 = vld [vmem:[%s571_s2] sm:$0xff] }
   0x6   :  { %391 = vmatprep.subr.msk.mxu0 %vm59_vm0, %v29_v2  ;;  %56 = vperm.xlu0 %415, %v38_v5  }
   0x7   :  { %416 = vset.pattern.permute.xlu1 %v439_v4 }
   0x8   :  { %46 = vperm.xlu1 %416, %v36_v6  }
   0x9   :  { %392 = vmatpush3.xpose.msk.msra.mxu0 %vm59_vm0, %v29_v2 }
   0xa   :  { %14 = vsyncpa [#allocation4], 0  ;;  %v33_v10 = vld [vmem:[%s570_s1 + $0x10] sm:$0xff]  ;;  %51 = vperm.xlu0 %415, %v37_v7   ;;  %v171_v11 = vld [vmem:[%s573_s4] sm:$0xff]  ;;  %vm195_vm1 = vcmask 261120   ;;  %v344_v7 = vlaneseq  ;;  %vm349_vm2 = vcmask 122880  }
   0xb   :  { %v34_v12 = vld [vmem:[%s570_s1 + $0x18] sm:$0xff]  ;;  %v172_v13 = vld [vmem:[%s573_s4 + $0x8] sm:$0xff]  ;;  %v173_v14 = vld [vmem:[%s573_s4 + $0x10] sm:$0xff] }
   0xc   :  { %394 = vmatmul.mubr.msk.f32.vlgmr.msra.gmra.mxu0 %vm59_vm0, %v32_v8  ;;  %41 = vperm.xlu1 %416, %v35_v9   ;;  %v174_v15 = vld [vmem:[%s573_s4 + $0x18] sm:$0xff]  ;;  %v297_v16 = vld [vmem:[%s574_s5] sm:$0xff]  ;;  %v298_v17 = vld [vmem:[%s574_s5 + $0x8] sm:$0xff] }
   0xd   :  { %396 = vmatprep.mubr.msk.f32.mxu0 %vm59_vm0, %v33_v10  ;;  %v299_v18 = vld [vmem:[%s574_s5 + $0x10] sm:$0xff]  ;;  %v300_v19 = vld [vmem:[%s574_s5 + $0x18] sm:$0xff]  ;;  %v338_v20 = vld [vmem:[#allocation2] sm:$0x1]  ;;  %v345_v10 = vshrl.u32 %v344_v7, 7 }
   0xe   :  { %177 = vperm.xlu0 %415, %v171_v11   ;;  %v167_v21 = vld [vmem:[%s572_s3] sm:$0xff]  ;;  %v168_v38 = vld [vmem:[%s572_s3 + $0x8] sm:$0xff]  ;;  %v169_v39 = vld [vmem:[%s572_s3 + $0x10] sm:$0xff] }
   0xf   :  { %407 = vmatprep.mubr.msk.f32.mxu1 %vm195_vm1, %v167_v21  ;;  %v170_v40 = vld [vmem:[%s572_s3 + $0x18] sm:$0xff]  ;;  %s440_s3 = smov [#allocation3]  }
  0x10   :  { %397 = vmatmul.mubr.msk.f32.gmra.mxu0 %vm59_vm0, %v34_v12  ;;  %182 = vperm.xlu1 %416, %v172_v13   ;;  %v346_v13 = vsub.s32 0, %v345_v10  ;;  %s357_s16 = sshll.u32 %s440_s3, 4  ;;  %s358_s16 = int_to_ptr.vmem [resolvable:$true] %s357_s16 }
  0x11   :  { %s417_s17 = scalar_lea.vmem %s358_s16, 16  ;;  %s421_s18 = scalar_lea.vmem %s358_s16, 32 }
  0x12   :  { %187 = vperm.xlu0 %415, %v173_v14   ;;  %p418_p0 = scmp.ne.s32.totalorder %s358_s16, %s417_s17  ;;  %p422_p1 = scmp.lt.s32.totalorder %s358_s16, %s358_s16 }
  0x13   :  { %p423_p2 = scmp.lt.s32.totalorder %s421_s18, %s417_s17 }
  0x14   :  { %192 = vperm.xlu1 %416, %v174_v15  }
  0x15   :  { %p424_p3 = por %p423_p2, %p422_p1 }
  0x16   :  { %303 = vperm.xlu0 %415, %v297_v16  }
  0x17   :  { %p425_p4 = pnand %p424_p3, %p418_p0 }
  0x18   :  { %308 = vperm.xlu1 %416, %v298_v17  }
  0x1a   :  { %313 = vperm.xlu0 %415, %v299_v18  }
  0x1c   :  { %318 = vperm.xlu1 %416, %v300_v19  }
  0x1e   :  { %341 = vperm.xlu0 %415, %v338_v20  }
  0x81   :  { %v57_v22 = vpop.permute.xlu0 %56 }
  0x83   :  { %v47_v24 = vpop.permute.xlu1 %46 }
  0x85   :  { %v52_v28 = vpop.permute.xlu0 %51 }
  0x87   :  { %v42_v33 = vpop.permute.xlu1 %41 }
  0x89   :  { %v178_v41 = vpop.permute.xlu0 %177 }
  0x8b   :  { %v183_v42 = vpop.permute.xlu1 %182 }
  0x8d   :  { %v188_v43 = vpop.permute.xlu0 %187 }
  0x8f   :  { %v193_v44 = vpop.permute.xlu1 %192 }
  0x91   :  { %v304_v48 = vpop.permute.xlu0 %303 }
  0x93   :  { %v309_v51 = vpop.permute.xlu1 %308 }
  0x95   :  { %v314_v62 = vpop.permute.xlu0 %313 }
  0x97   :  { %v319_v63 = vpop.permute.xlu1 %318 }
  0x99   :  { %v342_v15 = vpop.permute.xlu0 %341 }
  0x9a   :  { %v347_v17 = vrot.slane %v342_v15, %v346_v13 }
  0xcc   :  { %v395_v23 = vpop.f32.mrf.mxu0 }
  0xcd   :  { %v150_v30 = vadd.f32 %v395_v23, %v47_v24 }
  0xce   :  { %v144_v25 = vpop.f32.mrf.mxu0 }
  0xcf   :  { %v145_v34 = vadd.f32 %v144_v25, %v42_v33  ;;  %v164_v36 = vmax.f32 %v150_v30, 0.0 }
  0xd0   :  { %v398_v26 = vpop.f32.mrf.mxu0 }
  0xd1   :  { %v160_v27 = vadd.f32 %v398_v26, %v57_v22  ;;  %v163_v37 = vmax.f32 %v145_v34, 0.0 }
  0xd2   :  { %v154_v29 = vpop.f32.mrf.mxu0 }
  0xd3   :  { %v166_v31 = vmax.f32 %v160_v27, 0.0  ;;  %v155_v32 = vadd.f32 %v154_v29, %v52_v28 }
  0xd5   :  { %v165_v35 = vmax.f32 %v155_v32, 0.0  ;;  %399 = vmatprep.subr.mxu1 %v166_v31 }
  0xd6   :  { %400 = vmatpush3.msra.mxu1 %v166_v31 }
  0xd7   :  { %401 = vmatprep.subr.mxu1 %v165_v35 }
  0xd8   :  { %402 = vmatpush3.msra.mxu1 %v165_v35 }
  0xd9   :  { %403 = vmatprep.subr.mxu1 %v164_v36 }
  0xda   :  { %404 = vmatpush3.msra.mxu1 %v164_v36 }
  0xdb   :  { %405 = vmatprep.subr.mxu1 %v163_v37 }
  0xdc   :  { %406 = vmatpush3.msra.mxu1 %v163_v37 }
  0xdd   :  { %408 = vmatmul.mubr.msk.f32.vlgmr.msra.gmra.mxu1 %vm195_vm1, %v168_v38 }
  0xde   :  { %410 = vmatprep.mubr.msk.f32.mxu1 %vm195_vm1, %v169_v39 }
  0xe1   :  { %411 = vmatmul.mubr.msk.f32.gmra.mxu1 %vm195_vm1, %v170_v40 }
 0x19d   :  { %v409_v45 = vpop.f32.mrf.mxu1 }
 0x19e   :  { %v280_v46 = vadd.f32 %v409_v45, %v183_v42 }
 0x19f   :  { %v274_v47 = vpop.f32.mrf.mxu1 }
 0x1a0   :  { %v294_v49 = vmax.f32 %v280_v46, 0.0  ;;  %v275_v50 = vadd.f32 %v274_v47, %v178_v41 }
 0x1a1   :  { %v412_v52 = vpop.f32.mrf.mxu1 }
 0x1a2   :  { %v293_v53 = vmax.f32 %v275_v50, 0.0  ;;  %v290_v54 = vadd.f32 %v412_v52, %v193_v44  ;;  %v322_v56 = vmul.f32 %v309_v51, %v294_v49 }
 0x1a3   :  { %v284_v55 = vpop.f32.mrf.mxu1 }
 0x1a4   :  { %v321_v57 = vmul.f32 %v304_v48, %v293_v53  ;;  %v296_v58 = vmax.f32 %v290_v54, 0.0  ;;  %v285_v59 = vadd.f32 %v284_v55, %v188_v43  ;;  %v326_v0 = vsel %vm59_vm0, %v322_v56, 0.0 }
 0x1a6   :  { %v325_v60 = vsel %vm59_vm0, %v321_v57, 0.0  ;;  %v295_v61 = vmax.f32 %v285_v59, 0.0  ;;  %v324_v1 = vmul.f32 %v319_v63, %v296_v58 }
 0x1a7   :  { %v327_v3 = vadd.f32 %v326_v0, %v325_v60 }
 0x1a8   :  { %v323_v2 = vmul.f32 %v314_v62, %v295_v61  ;;  %v330_v6 = vsel %vm59_vm0, %v324_v1, 0.0 }
 0x1aa   :  { %v328_v4 = vsel %vm59_vm0, %v323_v2, 0.0 }
 0x1ab   :  { %v329_v5 = vadd.f32 %v328_v4, %v327_v3 }
 0x1ad   :  { %v331_v8 = vadd.f32 %v330_v6, %v329_v5 }
 0x1af   :  { %v332_v9 = vrot.slane %v331_v8, 4 }
 0x1b1   :  { %v333_v11 = vadd.f32 %v332_v9, %v331_v8 }
 0x1b3   :  { %v334_v12 = vrot.slane %v333_v11, 2 }
 0x1b5   :  { %v335_v14 = vadd.f32 %v334_v12, %v333_v11 }
 0x1b7   :  { %v336_v16 = vrot.slane %v335_v14, 1 }
 0x1b9   :  { %v337_v18 = vadd.f32 %v336_v16, %v335_v14 }
 0x1bb   :  { %v348_v19 = vadd.f32 %v347_v17, %v337_v18 }
 0x1bd   :  { %350 = vst.msk [vmem:[#allocation3] sm:$0x1] %vm349_vm2, %v348_v19 }
 0x1be   :  { %428 = shalt.err (!%p425_p4)
}
 0x1bf   :  { %360 = dma.vmem_to_hbm [thread:$0]  %s358_s16, 16, %s576_s7, [#allocation4]  }
 0x1c0   :  { %437 = dma.done.wait [#allocation4], 16  }
 0x1c1   :  { %438 = vsyncadd [#allocation4], 4294967280 }
 0x1c2   :  { %364 = vsyncpa [#allocation4], 1 }

</bundles_post_ra>
